<compile_context>
chip_gen: v5e
topology: v5e:2x2
jax: 0.10.0
libtpu: 0.0.40
codegen_flags: <defaults>
</compile_context>

<pallas_src>
import functools

import jax
import jax.numpy as jnp
from jax import lax
from jax.experimental import pallas as pl
from jax.experimental.pallas import tpu as pltpu


def _round_up(v, m):
    return ((v + m - 1) // m) * m


def _default_vmem_limit():
    """Generation-aware VMEM budget: ~85% of physical, capped; safe fallback."""
    try:
        cap = getattr(pltpu.get_tpu_info(), "vmem_capacity_bytes", None)
    except Exception:
        cap = None
    if not cap:
        return 48 * 1024 * 1024
    return max(32 * 1024 * 1024, min(int(cap * 0.85), 112 * 1024 * 1024))


# ---------------------------------------------------------------------------
# Pallas kernel: grid = (token tiles, experts, H-chunks).
# Accumulate gate_w[t,e] * ((silu(x@w1_c) * (x@w3_c)) @ w2_c) over (e, c).
# ---------------------------------------------------------------------------
def _moe_ffn_kernel(flags_ref, remap_ref,            # scalar-prefetch (SMEM)
                    x_ref, w13_ref, w2_ref, wt_ref,  # inputs (VMEM tiles)
                    o_ref,                           # output tile
                    *scratch,                        # optional f32 accumulator
                    th, acc_in_out):
    t = pl.program_id(0)
    e = pl.program_id(1)
    c = pl.program_id(2)
    acc_ref = o_ref if acc_in_out else scratch[0]

    @pl.when(jnp.logical_and(e == 0, c == 0))
    def _init():
        acc_ref[...] = jnp.zeros_like(acc_ref)

    # Skip experts that no token in this tile was routed to.
    @pl.when(flags_ref[t, e] != 0)
    def _compute():
        x = x_ref[...]                                              # [tm, D]
        # Two static-ref-sliced matmuls (th is a multiple of 128, so the lane
        # slices are tile-aligned): no (tm, 2*th) f32 intermediate.
        h1 = jnp.dot(x, w13_ref[:, :th], preferred_element_type=jnp.float32)
        h3 = jnp.dot(x, w13_ref[:, th:], preferred_element_type=jnp.float32)
        h = (h1 * jax.nn.sigmoid(h1)) * h3                          # SwiGLU
        y = jnp.dot(h.astype(w2_ref.dtype), w2_ref[...],
                    preferred_element_type=jnp.float32)             # [tm, D]
        # Gate weight applied in f32 (wt is [tm, 1]).
        acc_ref[...] += y * wt_ref[...]

    if not acc_in_out:
        @pl.when(jnp.logical_and(e == pl.num_programs(1) - 1,
                                 c == pl.num_programs(2) - 1))
        def _finalize():
            o_ref[...] = acc_ref[...].astype(o_ref.dtype)


def moe_ffn_pallas(x_flat, w13_chunks, w2_chunks, dense_w, *,
                   block_tokens=512, out_dtype=None, vmem_limit_bytes=None):
    """Weighted sum over experts of SwiGLU FFNs.

    x_flat:     [T, D]            compute dtype (bf16 preferred)
    w13_chunks: [E, nh, D, 2*th]  per-H-chunk fused (w1 | w3), stored in->out
    w2_chunks:  [E, nh, th, D]    stored in->out
    dense_w:    [T, E] float32    dense per-(token, expert) gate weights
    """
    T, D = x_flat.shape
    E, nh, _, th2 = w13_chunks.shape
    th = th2 // 2
    out_dtype = jnp.dtype(x_flat.dtype if out_dtype is None else out_dtype)
    if vmem_limit_bytes is None:
        vmem_limit_bytes = _default_vmem_limit()

    # ---- token tile: MXU-aligned (128 preferred; 16 for bf16 sublanes) -----
    sub = 16 if x_flat.dtype == jnp.bfloat16 else 8
    tm = min(block_tokens, _round_up(T, sub))
    tm = (tm // 128) * 128 if tm >= 128 else max(sub, (tm // sub) * sub)
    t_pad = pl.cdiv(T, tm) * tm
    if t_pad != T:
        x_flat = jnp.pad(x_flat, ((0, t_pad - T), (0, 0)))
        dense_w = jnp.pad(dense_w, ((0, t_pad - T), (0, 0)))
    nt = t_pad // tm

    # ---- per-(tile, expert) routing tables (scalar-prefetched to SMEM) -----
    tiles = dense_w.reshape(nt, tm, E)
    flags = (tiles != 0).any(axis=1).astype(jnp.int32)               # [nt, E]

    # remap[t, e] = nearest live expert at-or-before e in row t, primed with
    # the first live expert of the tile.  Dead experts reuse the already
    # fetched weight block so their weight DMA is skipped by the pipeliner.
    first_live = jnp.argmax(flags, axis=1).astype(jnp.int32)          # [nt]

    def _carry(carry, xs):
        live_col, e_idx = xs
        new = jnp.where(live_col != 0, e_idx, carry)
        return new, new

    _, remap_t = lax.scan(_carry, first_live,
                          (flags.T, jnp.arange(E, dtype=jnp.int32)))
    remap = remap_t.T                                                 # [nt, E]

    # Gate weights laid out [E, T, 1]: each grid step loads a (tm, 1) tile
    # that broadcasts directly against the (tm, D) expert output.
    wt_etl = dense_w.T[:, :, None].astype(jnp.float32)                # [E,T,1]

    acc_in_out = out_dtype == jnp.dtype(jnp.float32)
    kernel = functools.partial(_moe_ffn_kernel, th=th, acc_in_out=acc_in_out)

    def _w_idx(t, e, c, fl, rm):
        # Dead experts pin BOTH the expert and chunk index to the most
        # recently fetched live block -> no weight DMA for skipped steps.
        live = fl[t, e]
        return rm[t, e], c * live + (nh - 1) * (1 - live), 0, 0

    out = pl.pallas_call(
        kernel,
        out_shape=jax.ShapeDtypeStruct((t_pad, D), out_dtype),
        grid_spec=pltpu.PrefetchScalarGridSpec(
            num_scalar_prefetch=2,          # flags, remap
            grid=(nt, E, nh),
            in_specs=[
                # activations: per token tile, shared across experts/chunks
                pl.BlockSpec((tm, D), lambda t, e, c, fl, rm: (t, 0)),
                # fused w1|w3 chunk (default double-buffering kept on purpose)
                pl.BlockSpec((pl.Squeezed(), pl.Squeezed(), D, 2 * th), _w_idx),
                # w2 chunk
                pl.BlockSpec((pl.Squeezed(), pl.Squeezed(), th, D), _w_idx),
                # gate weights: (tm, 1) column for (tile, expert)
                pl.BlockSpec((pl.Squeezed(), tm, 1),
                             lambda t, e, c, fl, rm: (e, t, 0)),
            ],
            out_specs=pl.BlockSpec((tm, D), lambda t, e, c, fl, rm: (t, 0)),
            scratch_shapes=([] if acc_in_out
                            else [pltpu.VMEM((tm, D), jnp.float32)]),
        ),
        compiler_params=pltpu.CompilerParams(
            dimension_semantics=("parallel", "arbitrary", "arbitrary"),
            vmem_limit_bytes=vmem_limit_bytes,
        ),
    )(flags, remap, x_flat, w13_chunks, w2_chunks, wt_etl)

    return out[:T] if t_pad != T else out


# ---------------------------------------------------------------------------
# One-time weight preprocessing (keep OUT of the per-step hot path).
# ---------------------------------------------------------------------------
def prepare_moe_weights(w1, w3, w2, *, compute_dtype=jnp.bfloat16, h_chunk=512):
    """Fuse w1|w3 per lane-aligned H-chunk, zero-pad H, cast to compute dtype.

    w1, w3: [E, D, H] (stored in->out); w2: [E, H, D].
    Returns w13_chunks [E, nh, D, 2*th], w2_chunks [E, nh, th, D].
    Zero-padded H columns/rows contribute exactly 0, so padding is exact.
    """
    E, D, H = w1.shape
    th = max(128, (min(h_chunk, _round_up(H, 128)) // 128) * 128)
    Hp = _round_up(H, th)
    nh = Hp // th
    pad = Hp - H
    w1p = jnp.pad(w1, ((0, 0), (0, 0), (0, pad))).reshape(E, D, nh, th)
    w3p = jnp.pad(w3, ((0, 0), (0, 0), (0, pad))).reshape(E, D, nh, th)
    w13 = (jnp.concatenate([w1p, w3p], axis=-1)          # [E, D, nh, 2*th]
           .transpose(0, 2, 1, 3).astype(compute_dtype))  # [E, nh, D, 2*th]
    w2p = (jnp.pad(w2, ((0, 0), (0, pad), (0, 0)))
           .reshape(E, nh, th, D).astype(compute_dtype))   # [E, nh, th, D]
    return w13, w2p


# ---------------------------------------------------------------------------
# Glue: gate (softmax + top-k routing) in plain JAX, then the Pallas kernel.
# ---------------------------------------------------------------------------
def moe_feedforward(x, gate_w, w13_chunks, w2_chunks, *, top_k,
                    norm_topk_prob=True, block_tokens=512, out_dtype=None):
    """x: [B, S, D] -> [B, S, D] (eval-mode MOEFeedForward forward pass).

    w13_chunks / w2_chunks must include the shared expert as the LAST expert
    (modelled as one extra expert with gate weight 1.0 for every token).
    """
    B, S, D = x.shape
    T = B * S
    x_flat = x.reshape(T, D)

    # ---- MoEGate: logits -> softmax -> top-k -> optional renorm (f32) ------
    logits = x_flat.astype(jnp.float32) @ gate_w.astype(jnp.float32).T
    scores = jax.nn.softmax(logits, axis=-1)
    topk_weight, topk_idx = jax.lax.top_k(scores, top_k)
    if top_k > 1 and norm_topk_prob:
        topk_weight = topk_weight / (
            jnp.sum(topk_weight, axis=-1, keepdims=True) + 1e-20)

    n_routed = gate_w.shape[0]
    # Dense [T, E] gate weights via scatter-add (no T*K*E one-hot temp).
    dense = jnp.zeros((T, n_routed), jnp.float32).at[
        jnp.arange(T)[:, None], topk_idx].add(topk_weight)
    # Shared expert == one extra expert with weight 1.0 for every token.
    dense_full = jnp.concatenate(
        [dense, jnp.ones((T, 1), jnp.float32)], axis=1)              # [T,NE+1]

    cd = w13_chunks.dtype
    y_flat = moe_ffn_pallas(
        x_flat.astype(cd), w13_chunks, w2_chunks, dense_full,
        block_tokens=block_tokens,
        out_dtype=x.dtype if out_dtype is None else out_dtype)
    return y_flat.reshape(B, S, D)


# ---------------------------------------------------------------------------
# Pure-JAX reference (mirrors PyTorch eval-mode moe_infer + shared expert).
# ---------------------------------------------------------------------------
def moe_feedforward_ref(x, params, *, top_k, norm_topk_prob=True):
    B, S, D = x.shape
    T = B * S
    x_flat = x.reshape(T, D)
    logits = x_flat @ params["gate_w"].T
    scores = jax.nn.softmax(logits, axis=-1)
    topk_weight, topk_idx = jax.lax.top_k(scores, top_k)
    if top_k > 1 and norm_topk_prob:
        topk_weight = topk_weight / (
            jnp.sum(topk_weight, axis=-1, keepdims=True) + 1e-20)

    def ffn(xt, w1, w3, w2):
        h1 = xt @ w1
        return (jax.nn.silu(h1) * (xt @ w3)) @ w2

    n_routed = params["gate_w"].shape[0]
    out = jnp.zeros_like(x_flat)
    for e in range(n_routed):
        mask = jnp.sum(
            jnp.where(topk_idx == e, topk_weight, 0.0), axis=-1, keepdims=True)
        out = out + mask * ffn(x_flat, params["w1"][e], params["w3"][e],
                               params["w2"][e])
    out = out + ffn(x_flat, params["w1"][-1], params["w3"][-1],
                    params["w2"][-1])  # shared expert
    return out.reshape(B, S, D)


if __name__ == "__main__":
    # Small config consistent with LMConfig defaults shape-wise.
    dim = 64
    multiple_of = 16
    hidden = 4 * dim
    hidden = int(2 * hidden / 3)
    hidden = multiple_of * ((hidden + multiple_of - 1) // multiple_of)  # 176
    n_routed_experts = 8
    top_k = 2
    B, S = 2, 8
    E_total = n_routed_experts + 1  # + shared expert

    key = jax.random.PRNGKey(0)
    k_x, k_w1, k_w2, k_w3, k_g = jax.random.split(key, 5)
    params = {
        # stored in -> out so the kernel computes x @ W
        "w1": jax.random.normal(k_w1, (E_total, dim, hidden), jnp.float32) * 0.05,
        "w3": jax.random.normal(k_w3, (E_total, dim, hidden), jnp.float32) * 0.05,
        "w2": jax.random.normal(k_w2, (E_total, hidden, dim), jnp.float32) * 0.05,
        "gate_w": jax.random.normal(k_g, (n_routed_experts, dim), jnp.float32) * 0.1,
    }
    x = jax.random.normal(k_x, (B, S, dim), jnp.float32)

    y_ref = moe_feedforward_ref(x, params, top_k=top_k)

    # --- f32 compute path (tight tolerance).  Small token tile + h_chunk=128
    # so the demo exercises multiple token tiles, nh=2 H-chunks, the per-tile
    # expert-skip flags and the weight-DMA remap. ---
    w13_f32, w2_f32 = prepare_moe_weights(
        params["w1"], params["w3"], params["w2"],
        compute_dtype=jnp.float32, h_chunk=128)
    run_f32 = jax.jit(functools.partial(
        moe_feedforward, top_k=top_k, block_tokens=8))
    y = run_f32(x, params["gate_w"], w13_f32, w2_f32)
    jax.block_until_ready(y)
    assert y.shape == x.shape
    assert jnp.allclose(y, y_ref, atol=1e-3, rtol=1e-3), "f32 mismatch vs ref"

    # --- bf16 compute path (default inference path): MXU-native, half the
    # weight DMA bytes; f32 MXU accumulation keeps it close to the f32 ref. ---
    w13_bf, w2_bf = prepare_moe_weights(
        params["w1"], params["w3"], params["w2"],
        compute_dtype=jnp.bfloat16, h_chunk=128)
    run_bf16 = jax.jit(functools.partial(moe_feedforward, top_k=top_k))
    y_bf16 = run_bf16(x, params["gate_w"], w13_bf, w2_bf)
    jax.block_until_ready(y_bf16)
    assert y_bf16.shape == x.shape
    assert jnp.allclose(y_bf16, y_ref, atol=5e-2, rtol=5e-2), \
        "bf16 mismatch vs ref"

    # --- bf16 output: exercises the separate f32 scratch-accumulator path. ---
    run_bf16_out = jax.jit(functools.partial(
        moe_feedforward, top_k=top_k, out_dtype=jnp.bfloat16))
    y_bb = run_bf16_out(x, params["gate_w"], w13_bf, w2_bf)
    jax.block_until_ready(y_bb)
    assert y_bb.dtype == jnp.bfloat16
    assert jnp.allclose(y_bb.astype(jnp.float32), y_ref,
                        atol=5e-2, rtol=5e-2), "bf16-out mismatch vs ref"

    print("KERNEL_OK")
</pallas_src>

<mosaic_0001>
module attributes {stable_mosaic.version = 11 : i64} {
  func.func @_moe_ffn_kernel(%arg0: i32, %arg1: i32, %arg2: i32, %arg3: memref<2x9xi32, #tpu.memory_space<smem>>, %arg4: memref<2x9xi32, #tpu.memory_space<smem>>, %arg5: memref<8x64xf32, #tpu.memory_space<vmem>>, %arg6: memref<1x1x64x256xf32, #tpu.memory_space<vmem>>, %arg7: memref<1x1x128x64xf32, #tpu.memory_space<vmem>>, %arg8: memref<1x8x1xf32, #tpu.memory_space<vmem>>, %arg9: memref<8x64xf32, #tpu.memory_space<vmem>>) attributes {dimension_semantics = [#tpu.dimension_semantics<parallel>, #tpu.dimension_semantics<arbitrary>, #tpu.dimension_semantics<arbitrary>], iteration_bounds = array<i64: 2, 9, 2>, scalar_prefetch = 2 : i64, scratch_operands = 0 : i64, tpu.core_type = #tpu.core_type<tc>, window_params = [{transform_indices = @transform_0, window_bounds = array<i64: 8, 64>}, {transform_indices = @transform_1, window_bounds = array<i64: 1, 1, 64, 256>}, {transform_indices = @transform_2, window_bounds = array<i64: 1, 1, 128, 64>}, {transform_indices = @transform_3, window_bounds = array<i64: 1, 8, 1>}, {transform_indices = @transform_4, window_bounds = array<i64: 8, 64>}]} {
    %c0_i32 = arith.constant 0 : i32
    %0 = arith.cmpi eq, %arg1, %c0_i32 : i32
    %c0_i32_0 = arith.constant 0 : i32
    %1 = arith.cmpi eq, %arg2, %c0_i32_0 : i32
    %2 = arith.andi %0, %1 : i1
    %3 = arith.extui %2 : i1 to i32
    %c0_i32_1 = arith.constant 0 : i32
    %4 = arith.cmpi ne, %3, %c0_i32_1 : i32
    scf.if %4 {
      %cst = arith.constant 0.000000e+00 : f32
      %11 = vector.broadcast %cst : f32 to vector<8x64xf32>
      %c0 = arith.constant 0 : index
      %c0_4 = arith.constant 0 : index
      %12 = vector.load %arg9[%c0, %c0_4] : memref<8x64xf32, #tpu.memory_space<vmem>>, vector<8x64xf32>
      tpu.vector_store %arg9[%c0, %c0_4], %11 {strides = array<i32>} : memref<8x64xf32, #tpu.memory_space<vmem>>, vector<8x64xf32>,
    } else {
    }
    %5 = arith.index_cast %arg0 : i32 to index
    %6 = arith.index_cast %arg1 : i32 to index
    %7 = memref.load %arg3[%5, %6] : memref<2x9xi32, #tpu.memory_space<smem>>
    %c0_i32_2 = arith.constant 0 : i32
    %8 = arith.cmpi ne, %7, %c0_i32_2 : i32
    %9 = arith.extui %8 : i1 to i32
    %c0_i32_3 = arith.constant 0 : i32
    %10 = arith.cmpi ne, %9, %c0_i32_3 : i32
    scf.if %10 {
      %c0 = arith.constant 0 : index
      %c0_4 = arith.constant 0 : index
      %11 = vector.load %arg5[%c0, %c0_4] : memref<8x64xf32, #tpu.memory_space<vmem>>, vector<8x64xf32>
      %c0_5 = arith.constant 0 : index
      %c0_6 = arith.constant 0 : index
      %c0_7 = arith.constant 0 : index
      %c0_8 = arith.constant 0 : index
      %12 = vector.load %arg6[%c0_5, %c0_6, %c0_7, %c0_8] : memref<1x1x64x256xf32, #tpu.memory_space<vmem>>, vector<1x1x64x128xf32>
      %13 = vector.shape_cast %12 : vector<1x1x64x128xf32> to vector<64x128xf32>
      %cst = arith.constant dense<0.000000e+00> : vector<8x128xf32>
      %14 = tpu.matmul %11, %13, %cst {dimension_numbers = #tpu.dot_dimension_numbers<[1], [0], [0], [1], [0, 0, 1, 1], [], []>} : vector<8x64xf32>, vector<64x128xf32>, vector<8x128xf32> -> vector<8x128xf32>
      %c0_9 = arith.constant 0 : index
      %c0_10 = arith.constant 0 : index
      %c0_11 = arith.constant 0 : index
      %c128 = arith.constant 128 : index
      %15 = vector.load %arg6[%c0_9, %c0_10, %c0_11, %c128] : memref<1x1x64x256xf32, #tpu.memory_space<vmem>>, vector<1x1x64x128xf32>
      %16 = vector.shape_cast %15 : vector<1x1x64x128xf32> to vector<64x128xf32>
      %cst_12 = arith.constant dense<0.000000e+00> : vector<8x128xf32>
      %17 = tpu.matmul %11, %16, %cst_12 {dimension_numbers = #tpu.dot_dimension_numbers<[1], [0], [0], [1], [0, 0, 1, 1], [], []>} : vector<8x64xf32>, vector<64x128xf32>, vector<8x128xf32> -> vector<8x128xf32>
      %18 = arith.negf %14 : vector<8x128xf32>
      %19 = math.exp %18 : vector<8x128xf32>
      %cst_13 = arith.constant 1.000000e+00 : f32
      %20 = vector.broadcast %cst_13 : f32 to vector<8x128xf32>
      %21 = arith.addf %20, %19 : vector<8x128xf32>
      %22 = arith.divf %20, %21 : vector<8x128xf32>
      %23 = arith.mulf %14, %22 : vector<8x128xf32>
      %24 = arith.mulf %23, %17 : vector<8x128xf32>
      %c0_14 = arith.constant 0 : index
      %c0_15 = arith.constant 0 : index
      %c0_16 = arith.constant 0 : index
      %c0_17 = arith.constant 0 : index
      %25 = vector.load %arg7[%c0_14, %c0_15, %c0_16, %c0_17] : memref<1x1x128x64xf32, #tpu.memory_space<vmem>>, vector<1x1x128x64xf32>
      %26 = vector.shape_cast %25 : vector<1x1x128x64xf32> to vector<128x64xf32>
      %cst_18 = arith.constant dense<0.000000e+00> : vector<8x64xf32>
      %27 = tpu.matmul %24, %26, %cst_18 {dimension_numbers = #tpu.dot_dimension_numbers<[1], [0], [0], [1], [0, 0, 1, 1], [], []>} : vector<8x128xf32>, vector<128x64xf32>, vector<8x64xf32> -> vector<8x64xf32>
      %c0_19 = arith.constant 0 : index
      %c0_20 = arith.constant 0 : index
      %28 = vector.load %arg9[%c0_19, %c0_20] : memref<8x64xf32, #tpu.memory_space<vmem>>, vector<8x64xf32>
      %c0_21 = arith.constant 0 : index
      %c0_22 = arith.constant 0 : index
      %c0_23 = arith.constant 0 : index
      %29 = vector.load %arg8[%c0_21, %c0_22, %c0_23] : memref<1x8x1xf32, #tpu.memory_space<vmem>>, vector<1x8x1xf32>
      %30 = vector.shape_cast %29 : vector<1x8x1xf32> to vector<8x1xf32>
      %31 = vector.broadcast %30 : vector<8x1xf32> to vector<8x64xf32>
      %32 = arith.mulf %27, %31 : vector<8x64xf32>
      %33 = arith.addf %28, %32 : vector<8x64xf32>
      %c0_24 = arith.constant 0 : index
      %c0_25 = arith.constant 0 : index
      %34 = vector.load %arg9[%c0_24, %c0_25] : memref<8x64xf32, #tpu.memory_space<vmem>>, vector<8x64xf32>
      tpu.vector_store %arg9[%c0_24, %c0_25], %33 {strides = array<i32>} : memref<8x64xf32, #tpu.memory_space<vmem>>, vector<8x64xf32>,
    } else {
    }
    return
  }
  func.func @transform_0(%arg0: i32, %arg1: i32, %arg2: i32, %arg3: memref<2x9xi32, #tpu.memory_space<smem>>, %arg4: memref<2x9xi32, #tpu.memory_space<smem>>) -> (i32, i32) {
    %c0_i32 = arith.constant 0 : i32
    %c0_i32_0 = arith.constant 0 : i32
    return %arg0, %c0_i32 : i32, i32
  }
  func.func @transform_1(%arg0: i32, %arg1: i32, %arg2: i32, %arg3: memref<2x9xi32, #tpu.memory_space<smem>>, %arg4: memref<2x9xi32, #tpu.memory_space<smem>>) -> (i32, i32, i32, i32) {
    %0 = arith.index_cast %arg0 : i32 to index
    %1 = arith.index_cast %arg1 : i32 to index
    %2 = memref.load %arg3[%0, %1] : memref<2x9xi32, #tpu.memory_space<smem>>
    %3 = arith.index_cast %arg0 : i32 to index
    %4 = arith.index_cast %arg1 : i32 to index
    %5 = memref.load %arg4[%3, %4] : memref<2x9xi32, #tpu.memory_space<smem>>
    %6 = arith.muli %arg2, %2 : i32
    %c1_i32 = arith.constant 1 : i32
    %7 = arith.subi %c1_i32, %2 : i32
    %c1_i32_0 = arith.constant 1 : i32
    %8 = arith.muli %c1_i32_0, %7 : i32
    %9 = arith.addi %6, %8 : i32
    %c0_i32 = arith.constant 0 : i32
    %c0_i32_1 = arith.constant 0 : i32
    %c0_i32_2 = arith.constant 0 : i32
    return %5, %9, %c0_i32, %c0_i32_1 : i32, i32, i32, i32
  }
  func.func @transform_2(%arg0: i32, %arg1: i32, %arg2: i32, %arg3: memref<2x9xi32, #tpu.memory_space<smem>>, %arg4: memref<2x9xi32, #tpu.memory_space<smem>>) -> (i32, i32, i32, i32) {
    %0 = arith.index_cast %arg0 : i32 to index
    %1 = arith.index_cast %arg1 : i32 to index
    %2 = memref.load %arg3[%0, %1] : memref<2x9xi32, #tpu.memory_space<smem>>
    %3 = arith.index_cast %arg0 : i32 to index
    %4 = arith.index_cast %arg1 : i32 to index
    %5 = memref.load %arg4[%3, %4] : memref<2x9xi32, #tpu.memory_space<smem>>
    %6 = arith.muli %arg2, %2 : i32
    %c1_i32 = arith.constant 1 : i32
    %7 = arith.subi %c1_i32, %2 : i32
    %c1_i32_0 = arith.constant 1 : i32
    %8 = arith.muli %c1_i32_0, %7 : i32
    %9 = arith.addi %6, %8 : i32
    %c0_i32 = arith.constant 0 : i32
    %c0_i32_1 = arith.constant 0 : i32
    %c0_i32_2 = arith.constant 0 : i32
    return %5, %9, %c0_i32, %c0_i32_1 : i32, i32, i32, i32
  }
  func.func @transform_3(%arg0: i32, %arg1: i32, %arg2: i32, %arg3: memref<2x9xi32, #tpu.memory_space<smem>>, %arg4: memref<2x9xi32, #tpu.memory_space<smem>>) -> (i32, i32, i32) {
    %c0_i32 = arith.constant 0 : i32
    %c0_i32_0 = arith.constant 0 : i32
    return %arg1, %arg0, %c0_i32 : i32, i32, i32
  }
  func.func @transform_4(%arg0: i32, %arg1: i32, %arg2: i32, %arg3: memref<2x9xi32, #tpu.memory_space<smem>>, %arg4: memref<2x9xi32, #tpu.memory_space<smem>>) -> (i32, i32) {
    %c0_i32 = arith.constant 0 : i32
    %c0_i32_0 = arith.constant 0 : i32
    return %arg0, %c0_i32 : i32, i32
  }
}

</mosaic_0001>

<bundles_post_ra>
// kernel: custom-call.2
= control target key start
LH: loop header
LB: loop body
LE: loop exit
PB: predicated region body
PF: predicated region fallthrough
CT: control target
= control target key end

     0   :  { %s6_s0 = inlined_call_operand.vmem [shape: s32[9,2], index: 0, kind: output, shape index: {}]  }

// kernel: moe_feedforward.1
= control target key start
LH: loop header
LB: loop body
LE: loop exit
PB: predicated region body
PF: predicated region fallthrough
CT: control target
= control target key end

     0   :  { %s1058_s27 = smov [#allocation3]   ;;  %s1059_s28 = smov [#allocation4]   ;;  %s1333_s0 = inlined_call_operand.vmem [shape: s32[2,9], index: 0, kind: input, shape index: {}]   ;;  %s1334_s2 = inlined_call_operand.vmem [shape: f32[16,64], index: 2, kind: input, shape index: {}]   ;;  %s1335_s3 = inlined_call_operand.vmem [shape: f32[9,2,64,256], index: 3, kind: input, shape index: {}]   ;;  %s1336_s4 = inlined_call_operand.vmem [shape: f32[9,2,128,64], index: 4, kind: input, shape index: {}]   ;;  %s1337_s5 = inlined_call_operand.vmem [shape: f32[9,16,1], index: 5, kind: input, shape index: {}]   ;;  %s1338_s6 = inlined_call_operand.hbm [shape: f32[16,64], index: 6, kind: output, shape index: {}]   ;;  %s1339_s1 = inlined_call_operand.vmem [shape: s32[2,9], index: 1, kind: input, shape index: {}]  }
   0x1   :  { %1351 = sst [smem:[#allocation20_spill]] %s1334_s2  ;;  %s12_s23 = sshll.u32 %s1333_s0, 4  ;;  %s13_s23 = int_to_ptr.vmem [resolvable:$true] %s12_s23 }
   0x2   :  { %1352 = sst [smem:[#allocation21_spill]] %s1338_s6  ;;  %s17_s26 = sshll.u32 %s1339_s1, 4  ;;  %s18_s26 = int_to_ptr.vmem [resolvable:$true] %s17_s26 }
   0x3   :  { %15 = dma.vmem_to_smem %s13_s23, 32, %s1058_s27, [#allocation2] }
   0x4   :  { %20 = dma.vmem_to_smem %s18_s26, 32, %s1059_s28, [#allocation2] }
   0x5   :  { %1012 = dma.done.wait [#allocation2], 64 }
   0x6   :  { %1013 = vsyncadd [#allocation2], 4294967232 }
   0x7   :  { %23 = sfence }
   0x8   :  { %24 = vsyncpa [#allocation6], 0 }
   0x9   :  { %26 = vsyncpa [#allocation6 + $0x1], 0  ;;  %s1103_s29 = smov 0   ;;  %s1105_s30 = smov 0  }
   0xa   :  { %s1107_s0 = smov 0   ;;  %s1109_s7 = smov 0  }
   0xb   :  { %s1111_s1 = smov 0   ;;  %s1113_s8 = smov 0  }
   0xc   :  { %s1115_s9 = smov 0   ;;  %s1117_s10 = smov 0  }
   0xd   :  { %s1119_s11 = smov 0   ;;  %s1121_s12 = smov 0  }
   0xe LB: > { %1353 = sst [smem:[#allocation9_spill]] %s1020_s29  ;;  %s794_s13 = sadd.s32 4294967295, %s1056_s12   ;;  %s1056_s12 = sphi %s1121_s12, %s32_s12   ;;  %s1052_s11 = sphi %s1119_s11, %s1380_s11   ;;  %s1048_s10 = sphi %s1117_s10, %s1379_s10   ;;  %s1044_s9 = sphi %s1115_s9, %s1378_s9   ;;  %s1040_s8 = sphi %s1113_s8, %s1377_s8   ;;  %s1036_s1 = sphi %s1111_s1, %s1376_s1   ;;  %s1032_s7 = sphi %s1109_s7, %s1375_s7   ;;  %s1028_s0 = sphi %s1107_s0, %s1374_s0   ;;  %s1024_s30 = sphi %s1105_s30, %s1382_s30   ;;  %s1020_s29 = sphi %s1103_s29, %s1381_s29  }
   0xf   : > { %1354 = sst [smem:[#allocation10_spill]] %s1028_s0  ;;  %s795_s14 = sadd.s32 4294967294, %s1056_s12  }
  0x10   : > { %1355 = sst [smem:[#allocation11_spill]] %s1044_s9  ;;  %s44_s15 = sadd.s32 1, %s1044_s9 }
  0x11   : > { %1356 = sst [smem:[#allocation12_spill]] %s1048_s10  ;;  %p45_p0 = scmp.ge.s32.totalorder %s44_s15, 2 }
  0x12   : > { %1357 = sst [smem:[#allocation13_spill]] %s1052_s11  ;;  %s47_s16 = sadd.s32 1, %s1048_s10 }
  0x13   : > { %1358 = sst [smem:[#allocation14_spill]] %s1056_s12  ;;  %s51_s17 = sadd.s32 1, %s1052_s11 }
  0x14   : > { %p226_p1 = scmp.ne.s32.totalorder %s1028_s0, %s1024_s30  ;;  %s1384_s15 = smov (%p45_p0, %s44_s15), 0 }
  0x15   : > { %1359 = sst [smem:[#allocation15_spill]] %s1384_s15  ;;  %s1386_s16 = smov (!%p45_p0, %s47_s16), %s1048_s10 }
  0x16   : > { %p227_p2 = scmp.eq.s32.totalorder %s794_s13, 35  ;;  %p232_p3 = scmp.ne.s32.totalorder %s1024_s30, %s1020_s29 }
  0x17   : > { %p49_p4 = scmp.ge.s32.totalorder %s1386_s16, 9  ;;  %p233_p5 = scmp.eq.s32.totalorder %s795_s14, 35 }
  0x18   : > { %p1165_p6 = por %p227_p2, %p226_p1  ;;  %p802_p7 = scmp.ge.s32.totalorder %s1056_s12, 1 }
  0x19   : > { %s1388_s16 = smov (%p49_p4, %s1386_s16), 0  ;;  %s1390_s17 = smov (!%p49_p4, %s51_s17), %s1052_s11 }
  0x1a   : > { %1361 = sst [smem:[#allocation16_spill]] %s1388_s16  ;;  %p1173_p8 = por %p233_p5, %p232_p3 }
  0x1b   : > { %p341_p9 = scmp.lt.s32.totalorder %s1056_s12, 37  ;;  %p53_p10 = scmp.ge.s32.totalorder %s1390_s17, 2 }
  0x1c   : > { %s1362_s19 = scalar_select %p1173_p8, 1, 0 }
  0x1d   : > { %p342_p11 = pnand %p802_p7, %p341_p9  ;;  %s1392_s17 = smov (%p53_p10, %s1390_s17), 0 }
  0x1e   : > { %1363 = sst [smem:[#allocation17_spill]] %s1362_s19  ;;  %s213_s20 = ssub.s32 %s1052_s11, %s1392_s17 }
  0x1f   : > { %1364 = sst [smem:[#allocation18_spill]] %s1392_s17  ;;  %s216_s21 = sadd.s32 1, %s1028_s0 }
  0x20   : > { %p214_p12 = scmp.eq.s32.totalorder %s213_s20, 0  ;;  %345 = sbr.rel (%p342_p11) target bundleno = 410 (0x19a), region = 36 }
  0x21   : > { %s1341_s23 = sand.u32 (!%p342_p11), 1, %s1024_s30   ;;  %p416_p13 = scmp.lt.s32.totalorder (!%p342_p11), %s1040_s8, 1 }
  0x22   : > { %s1184_s22 = scalar_select %p214_p12, %s1028_s0, %s216_s21  }
  0x23   : > { %s1190_s24 = sshll.u32 (!%p342_p11), %s1341_s23, 3  ;;  %s420_s25 = sshra.s32 (!%p342_p11), %s1036_s1, 7 }
  0x24   : > { %1365 = sst [smem:[#allocation19_spill]] %s1184_s22  ;;  %s422_s26 = sadd.s32 (!%p342_p11), %s1040_s8, %s420_s25 }
  0x25   : > { %s1195_s27 = scalar_select %p416_p13, %s1040_s8, 1 }
  0x26   : > { %s805_s28 = sshll.u32 %s422_s26, 7  ;;  %s425_s13 = sand.u32 127, %s1036_s1 }
  0x27   : > { %s804_s14 = sshll.u32 %s1195_s27, 3  ;;  %s1199_s20 = sadd.s32 %s805_s28, %s425_s13 }
  0x28   : > { %s1366_s2 = sld [smem:[#allocation20_spill]]  ;;  %p486_p0 = scmp.lt.s32.totalorder %s1036_s1, 8 }
  0x29   : > { %s427_s25 = sld [smem:[#allocation3 + %s1199_s20]]  ;;  %p494_p1 = scmp.eq.s32.totalorder %s1036_s1, 0 }
  0x2a   : > { %s428_s16 = sld [smem:[#allocation4 + %s1199_s20]]  ;;  %p495_p2 = scmp.eq.s32.totalorder %s1032_s7, 0 }
  0x2b   : > { %s460_s15 = sld [smem:[#allocation3 + %s1199_s20]]  ;;  %s1394_s1 = smov (!%p486_p0, %s1036_s1), 8 }
  0x2c   : > { %s461_s26 = sld [smem:[#allocation4 + %s1199_s20]]  ;;  %p1214_p3 = pnand %p495_p2, %p494_p1 }
  0x2d   : > { %s813_s21 = sshll.u32 %s1394_s1, 1 }
  0x2e   : > { %s1204_s23 = scalar_lea.vmem %s1366_s2, %s804_s14  ;;  %s491_s0 = sadd.s32 %s813_s21, %s1195_s27 }
  0x2f   : > { %s429_s17 = smul.u32 %s1032_s7, %s427_s25  ;;  %s430_s13 = ssub.s32 1, %s427_s25 }
  0x30   : > { %p432_p4 = scmp.lt.s32.totalorder %s428_s16, 8  ;;  %s814_s29 = sshll.u32 %s491_s0, 3 }
  0x31   : > { %s431_s11 = sadd.s32 %s430_s13, %s429_s17  ;;  %s462_s14 = smul.u32 %s1032_s7, %s460_s15 }
  0x32   : > { %s1396_s16 = smov (!%p432_p4, %s428_s16), 8  ;;  %p434_p5 = scmp.lt.s32.totalorder %s431_s11, 1 }
  0x33   : > { %s463_s2 = ssub.s32 1, %s460_s15  ;;  %s807_s10 = sshll.u32 %s1396_s16, 5 }
  0x34   : > { %s464_s9 = sadd.s32 %s463_s2, %s462_s14  ;;  %s1398_s11 = smov (!%p434_p5, %s431_s11), 1 }
  0x35   : > { %p465_p7 = scmp.lt.s32.totalorder %s461_s26, 8  ;;  %p467_p9 = scmp.lt.s32.totalorder %s464_s9, 1 }
  0x36   : > { %s806_s22 = sshll.u32 %s1398_s11, 4  ;;  %s1224_s1 = scalar_lea.vmem %s1337_s5, %s814_s29 }
  0x37   : > { %s438_s19 = sadd.s32 %s807_s10, %s806_s22  ;;  %s1400_s26 = smov (!%p465_p7, %s461_s26), 8 }
  0x38   : > { %s808_s12 = sshll.u32 %s438_s19, 3  ;;  %s1402_s9 = smov (!%p467_p9, %s464_s9), 1 }
  0x39   : > { %s1229_s15 = scalar_lea.vmem %s1335_s3, %s808_s12  ;;  %s811_s2 = sshll.u32 %s1400_s26, 5 }
  0x3a   : > { %s810_s16 = sshll.u32 %s1402_s9, 4  ;;  %s1237_s19 = scalar_lea.vmem [#allocation5], %s1190_s24 }
  0x3b   : > { %s471_s13 = sadd.s32 %s811_s2, %s810_s16  ;;  %499 = sbr.rel (%p1214_p3) target bundleno = 66 (0x42), region = 40 }
  0x3c   : > { %s812_s11 = sshll.u32 %s471_s13, 3 }
  0x3d   : > { %s1234_s0 = scalar_lea.vmem %s1336_s4, %s812_s11 }
  0x40   : > { %vm500_vm0 = vcmask 523264   ;;  %v1060_v0 = vmov 0.0  }
  0x41   : > { %501 = vst.msk [vmem:[%s1237_s19] sm:$0xff] %vm500_vm0, %v1060_v0 }
  0x42 PF: > { %s509_s6 = sld [smem:[#allocation3 + %s1199_s20]] }
  0x48   : > { %p816_p10 = scmp.eq.s32.totalorder %s509_s6, 0 }
  0x4a   : > { %513 = sbr.rel (%p816_p10) target bundleno = 390 (0x186), region = 44 }
  0x4f   : > { %v522_v1 = vld [vmem:[%s1229_s15 + $0x70] sm:$0xff]  ;;  %v521_v2 = vld [vmem:[%s1229_s15 + $0x60] sm:$0xff]  ;;  %v554_v4 = vld [vmem:[%s1229_s15 + $0x78] sm:$0xff]  ;;  %vm523_vm1 = vcmask 523264   ;;  %v1061_v37 = vmov 0  }
  0x50   : > { %535 = vmatpush.msra.mxu0 %v522_v1  ;;  %v520_v3 = vld [vmem:[%s1229_s15 + $0x50] sm:$0xff]  ;;  %v553_v5 = vld [vmem:[%s1229_s15 + $0x68] sm:$0xff]  ;;  %v519_v6 = vld [vmem:[%s1229_s15 + $0x40] sm:$0xff]  ;;  %563 = vmatpush.msra.mxu1 %v554_v4 }
  0x51   : > { %v552_v7 = vld [vmem:[%s1229_s15 + $0x58] sm:$0xff]  ;;  %v518_v8 = vld [vmem:[%s1229_s15 + $0x30] sm:$0xff]  ;;  %v551_v9 = vld [vmem:[%s1229_s15 + $0x48] sm:$0xff]  ;;  %915 = vset.pattern.permute.xlu0 %v1061_v37 }
  0x52   : > { %536 = vmatpush.msra.mxu0 %v521_v2  ;;  %564 = vmatpush.msra.mxu1 %v553_v5  ;;  %v517_v10 = vld [vmem:[%s1229_s15 + $0x20] sm:$0xff]  ;;  %v550_v11 = vld [vmem:[%s1229_s15 + $0x38] sm:$0xff]  ;;  %v516_v12 = vld [vmem:[%s1229_s15 + $0x10] sm:$0xff] }
  0x53   : > { %v549_v13 = vld [vmem:[%s1229_s15 + $0x28] sm:$0xff]  ;;  %v515_v14 = vld [vmem:[%s1229_s15] sm:$0xff]  ;;  %v548_v16 = vld [vmem:[%s1229_s15 + $0x18] sm:$0xff] }
  0x54   : > { %537 = vmatpush.msra.mxu0 %v520_v3  ;;  %565 = vmatpush.msra.mxu1 %v552_v7  ;;  %v514_v15 = vld [vmem:[%s1204_s23] sm:$0xff]  ;;  %v547_v17 = vld [vmem:[%s1229_s15 + $0x8] sm:$0xff]  ;;  %v611_v18 = vld [vmem:[%s1234_s0 + $0x78] sm:$0xff] }
  0x55   : > { %612 = vmatpush.msra.mxu2 %v611_v18  ;;  %v610_v19 = vld [vmem:[%s1234_s0 + $0x70] sm:$0xff]  ;;  %v609_v20 = vld [vmem:[%s1234_s0 + $0x68] sm:$0xff]  ;;  %v608_v21 = vld [vmem:[%s1234_s0 + $0x60] sm:$0xff] }
  0x56   : > { %538 = vmatpush.msra.mxu0 %v519_v6  ;;  %566 = vmatpush.msra.mxu1 %v551_v9  ;;  %v607_v22 = vld [vmem:[%s1234_s0 + $0x58] sm:$0xff]  ;;  %v606_v23 = vld [vmem:[%s1234_s0 + $0x50] sm:$0xff]  ;;  %v605_v24 = vld [vmem:[%s1234_s0 + $0x48] sm:$0xff] }
  0x57   : > { %613 = vmatpush.msra.mxu2 %v610_v19  ;;  %v604_v25 = vld [vmem:[%s1234_s0 + $0x40] sm:$0xff]  ;;  %v603_v26 = vld [vmem:[%s1234_s0 + $0x38] sm:$0xff]  ;;  %v602_v27 = vld [vmem:[%s1234_s0 + $0x30] sm:$0xff] }
  0x58   : > { %539 = vmatpush.msra.mxu0 %v518_v8  ;;  %567 = vmatpush.msra.mxu1 %v550_v11  ;;  %v601_v28 = vld [vmem:[%s1234_s0 + $0x28] sm:$0xff]  ;;  %v600_v29 = vld [vmem:[%s1234_s0 + $0x20] sm:$0xff]  ;;  %v599_v30 = vld [vmem:[%s1234_s0 + $0x18] sm:$0xff] }
  0x59   : > { %614 = vmatpush.msra.mxu2 %v609_v20  ;;  %v598_v31 = vld [vmem:[%s1234_s0 + $0x10] sm:$0xff]  ;;  %v597_v32 = vld [vmem:[%s1234_s0 + $0x8] sm:$0xff]  ;;  %v596_v33 = vld [vmem:[%s1234_s0] sm:$0xff] }
  0x5a   : > { %540 = vmatpush.msra.mxu0 %v517_v10  ;;  %568 = vmatpush.msra.mxu1 %v549_v13  ;;  %v633_v36 = vld [vmem:[%s1224_s1] sm:$0xff] }
  0x5b   : > { %615 = vmatpush.msra.mxu2 %v608_v21  ;;  %636 = vperm.xlu0 %915, %v633_v36   ;;  %v632_v55 = vld [vmem:[%s1237_s19] sm:$0xff] }
  0x5c   : > { %541 = vmatpush.msra.mxu0 %v516_v12  ;;  %569 = vmatpush.msra.mxu1 %v548_v16 }
  0x5d   : > { %616 = vmatpush.msra.mxu2 %v607_v22 }
  0x5e   : > { %542 = vmatpush.msra.mxu0 %v515_v14  ;;  %570 = vmatpush.msra.mxu1 %v547_v17 }
  0x5f   : > { %817 = vmatmul.msk.f32.vlgmr.msra.gmra.mxu0 %vm523_vm1, %v514_v15  ;;  %818 = vmatmul.msk.f32.vlgmr.msra.gmra.mxu1 %vm523_vm1, %v514_v15 }
  0x60   : > { %617 = vmatpush.msra.mxu2 %v606_v23 }
  0x62   : > { %618 = vmatpush.msra.mxu2 %v605_v24 }
  0x64   : > { %619 = vmatpush.msra.mxu2 %v604_v25 }
  0x66   : > { %620 = vmatpush.msra.mxu2 %v603_v26 }
  0x68   : > { %621 = vmatpush.msra.mxu2 %v602_v27 }
  0x6a   : > { %622 = vmatpush.msra.mxu2 %v601_v28 }
  0x6c   : > { %623 = vmatpush.msra.mxu2 %v600_v29 }
  0x6e   : > { %624 = vmatpush.msra.mxu2 %v599_v30 }
  0x70   : > { %625 = vmatpush.msra.mxu2 %v598_v31 }
  0x72   : > { %626 = vmatpush.msra.mxu2 %v597_v32 }
  0x74   : > { %627 = vmatpush.msra.mxu2 %v596_v33 }
  0xcd   : > { %v637_v53 = vpop.permute.xlu0 %636 }
  0xdc   : > { %v544_v34 = vpop.f32.mrf.mxu0  ;;  %v572_v50 = vpop.f32.mrf.mxu1 }
  0xdd   : > { %v819_v35 = vmul.f32 -1.442695, %v544_v34 }
  0xdf   : > { %916 = vpow2.f32 %v819_v35 }
  0xe5   : > { %v917_v38 = vpop.eup %916 }
  0xe6   : > { %v578_v39 = vadd.f32 1.0, %v917_v38 }
  0xe8   : > { %918 = vrcp.f32 %v578_v39  ;;  %v590_v43 = vand.u32 2147483648, %v578_v39  ;;  %v588_v45 = vand.u32 2147483647, %v578_v39  ;;  %vm584_vm3 = vweird.f32 %v578_v39 }
  0xea   : > { %v591_v47 = vor.u32 1.1754944e-38, %v590_v43  ;;  %vm589_vm5 = vcmp.eq.f32.partialorder %v588_v45, 8.507059e+37 }
  0xee   : > { %v919_v40 = vpop.eup %918 }
  0xef   : > { %v580_v41 = vmul.f32 %v919_v40, %v578_v39  ;;  %vm585_vm2 = vweird.f32 %v919_v40 }
  0xf0   : > { %vm586_vm4 = vmor %vm584_vm3, %vm585_vm2 }
  0xf1   : > { %v581_v42 = vsub.f32 1.0, %v580_v41 }
  0xf3   : > { %v582_v44 = vmul.f32 %v919_v40, %v581_v42 }
  0xf5   : > { %v583_v46 = vadd.f32 %v919_v40, %v582_v44 }
  0xf7   : > { %v587_v48 = vsel %vm586_vm4, %v919_v40, %v583_v46 }
  0xf8   : > { %v592_v49 = vsel %vm589_vm5, %v591_v47, %v587_v48 }
  0xf9   : > { %v594_v51 = vmul.f32 %v592_v49, %v544_v34 }
  0xfb   : > { %v595_v52 = vmul.f32 %v594_v51, %v572_v50 }
  0xfd   : > { %628 = vmatmul.f32.vlgmr.msra.gmra.mxu2 %v595_v52 }
 0x180   : > { %v629_v54 = vpop.f32.mrf.mxu2 }
 0x181   : > { %v639_v56 = vmul.f32 %v637_v53, %v629_v54 }
 0x183   : > { %v640_v57 = vadd.f32 %v639_v56, %v632_v55 }
 0x185   : > { %641 = vst.msk [vmem:[%s1237_s19] sm:$0xff] %vm523_vm1, %v640_v57 }
 0x186 PF: > { %s821_s29 = sshll.u32 %s1040_s8, 3  ;;  %s1368_s22 = sld [smem:[#allocation21_spill]] }
 0x187   : > { %s655_s24 = sshll.u32 %s1237_s19, 4  ;;  %s1369_s26 = sand.u32 1, %s1024_s30   ;;  %s656_s24 = int_to_ptr.vmem [resolvable:$true] %s655_s24 }
 0x188   : > { %s643_s28 = scalar_lea.sflag [#allocation6], %s1369_s26 }
 0x18c   : > { %s653_s23 = scalar_lea.hbm %s1368_s22, %s821_s29  ;;  %s964_s8 = scalar_lea.hbm %s1368_s22, 16 }
 0x18d   : > { %s657_s20 = sshll.u32 %s653_s23, 4  ;;  %s658_s20 = int_to_ptr.hbm [resolvable:$true] %s657_s20 }
 0x18e   : > { %s958_s21 = sshra.s32 %s658_s20, 4  ;;  %s959_s21 = int_to_ptr.hbm [resolvable:$true] %s958_s21 }
 0x18f   : > { %s960_s14 = scalar_lea.hbm %s959_s21, 8  ;;  %p965_p0 = scmp.lt.s32.totalorder %s959_s21, %s1368_s22 }
 0x190   : > { %p961_p11 = scmp.ne.s32.totalorder %s959_s21, %s960_s14  ;;  %p966_p1 = scmp.lt.s32.totalorder %s964_s8, %s960_s14 }
 0x192   : > { %p962_p12 = pnand %p961_p11, %p1165_p6  ;;  %p967_p2 = por %p966_p1, %p965_p0 }
 0x194   : > { %p963_p13 = pneg %p962_p12 }
 0x196   : > { %p968_p3 = pnand %p967_p2, %p963_p13 }
 0x198   : > { %971 = shalt.err (!%p968_p3)
}
 0x199   : > { %824 = dma.vmem_to_hbm [thread:$0]  (%p1165_p6), %s656_s24, 128, %s658_s20, %s643_s28  }
 0x19a PF: > { %s1370_s15 = sld [smem:[#allocation14_spill]] }
 0x19b   : > { %s1371_s2 = sld [smem:[#allocation9_spill]] }
 0x1a0   : > { %p830_p4 = scmp.ge.s32.totalorder %s1370_s15, 2 }
 0x1a1   : > { %s669_s13 = sand.u32 1, %s1371_s2  }
 0x1a2   : > { %p827_p5 = pnand %p830_p4, %p1173_p8  ;;  %s670_s11 = scalar_lea.sflag [#allocation6], %s669_s13 }
 0x1a4   : > { %p828_p7 = pneg %p827_p5 }
 0x1a6   : > { %1015 = dma.done.wait (%p828_p7), %s670_s11, 128  }
 0x1a7   : > { %1017 = vsyncadd (%p828_p7), %s670_s11, 4294967168  ;;  %s32_s12 = sadd.s32 1, %s1370_s15   ;;  %s1373_s27 = sld [smem:[#allocation10_spill]] }
 0x1a8   : > { %p29_p9 = scmp.ge.s32.totalorder %s32_s12, 38   ;;  %s1374_s0 = sld [smem:[#allocation19_spill]] }
 0x1a9   : > { %s1375_s7 = sld [smem:[#allocation11_spill]]  ;;  %s1381_s29 = smov %s1024_s30 }
 0x1aa   : > { %s1376_s1 = sld [smem:[#allocation12_spill]]  ;;  %31 = sbr.rel (!%p29_p9) target bundleno = 14 (0xe), region = 88 }
 0x1ab   : > { %s1377_s8 = sld [smem:[#allocation13_spill]] }
 0x1ac   : > { %s1378_s9 = sld [smem:[#allocation15_spill]] }
 0x1ad   : > { %s1379_s10 = sld [smem:[#allocation16_spill]]  ;;  %s1382_s30 = smov %s1373_s27 }
 0x1ae   : > { %s1380_s11 = sld [smem:[#allocation18_spill]] }
 0x1af   :  { %676 = vsyncpa [#allocation6], 1 }
 0x1b0   :  { %678 = vsyncpa [#allocation6 + $0x1], 1 }

</bundles_post_ra>
